<compile_context>
chip_gen: v5e
topology: v5e:2x2
jax: 0.10.0
libtpu: 0.0.40
codegen_flags: <defaults>
</compile_context>

<pallas_src>
import functools

import jax
import jax.numpy as jnp
from jax.experimental import pallas as pl
from jax.experimental.pallas import tpu as pltpu

BN_EPS = 1e-5
_INV_SQRT2 = 0.7071067811865476


def _round_up(x, m):
    return (x + m - 1) // m * m


# ---------------------------------------------------------------------------
# Pass 1: accumulate per-feature partial sum / sum-of-squares of h0 = x @ W1
# (no bias -- it cancels in train-mode BN). Grid = (n_split, tiles_per_split):
# the outer "parallel" axis owns its own (8, H) accumulator block (v7x: 2 TCs),
# the inner "arbitrary" axis walks the batch tiles.
# ---------------------------------------------------------------------------
def _stats_kernel(x_ref, w1_ref, sum_ref, sumsq_ref):
    i = pl.program_id(1)

    @pl.when(i == 0)
    def _():
        sum_ref[...] = jnp.zeros_like(sum_ref)
        sumsq_ref[...] = jnp.zeros_like(sumsq_ref)

    h0 = jnp.dot(x_ref[...], w1_ref[...], preferred_element_type=jnp.float32)
    tb, hdim = h0.shape
    # Partial reduce to (8, hdim): whole-vreg adds, sublane-aligned accumulator store.
    hg = h0.reshape(tb // 8, 8, hdim)
    sum_ref[...] += jnp.sum(hg, axis=0)
    sumsq_ref[...] += jnp.sum(hg * hg, axis=0)


# ---------------------------------------------------------------------------
# Pass 2: recompute the cheap Linear1 tile (K = in_dim is tiny), combine the
# per-split partial stats, apply the fused BN affine (one FMA per element),
# exact-erf GELU, Linear2. Independent per batch tile -> "parallel" grid axis.
# ---------------------------------------------------------------------------
def _apply_kernel(x_ref, w1_ref, sum_ref, sumsq_ref, gamma_ref, beta_ref,
                  w2_ref, b2_ref, o_ref, *, true_b):
    h0 = jnp.dot(x_ref[...], w1_ref[...], preferred_element_type=jnp.float32)

    inv_b = 1.0 / true_b
    mean = jnp.sum(sum_ref[...], axis=0, keepdims=True) * inv_b       # (1, H)
    ex2 = jnp.sum(sumsq_ref[...], axis=0, keepdims=True) * inv_b
    var = jnp.maximum(ex2 - mean * mean, 0.0)                         # biased variance
    scale = gamma_ref[...] * jax.lax.rsqrt(var + BN_EPS)              # rsqrt -> EUP slot
    shift = beta_ref[...] - mean * scale

    hn = h0 * scale + shift                                           # fused BN affine

    # GELU (exact, erf-based: PyTorch nn.GELU default). VALU-bound but required
    # for the 1e-4 tolerance.
    g = 0.5 * hn * (1.0 + jax.lax.erf(hn * _INV_SQRT2))

    out = jnp.dot(g, w2_ref[...], preferred_element_type=jnp.float32) + b2_ref[...]
    o_ref[...] = out.astype(o_ref.dtype)


def _vmem_cap_bytes():
    # 48 MiB is safe for v7x (64 MiB physical VMEM); allow ~96 MiB on 128 MiB parts.
    try:
        info = pltpu.get_tpu_info()
        cap = getattr(info, "vmem_capacity_bytes", None)
        if cap:
            return int(min(0.75 * cap, 96 << 20))
    except Exception:
        pass
    return 48 << 20


def _vmem_limit(tb, in_dim, hdim, out_dim, stats_rows):
    approx = 4 * (
        in_dim * hdim + hdim * out_dim                  # resident weights
        + (2 + 2 * stats_rows) * hdim + out_dim         # BN params / partial stats / b2
        + 2 * tb * (in_dim + out_dim)                   # double-buffered x / out tiles
        + 4 * tb * hdim                                 # h0 / GELU temporaries
    )
    return int(min(max(2 * approx, 16 << 20), _vmem_cap_bytes()))


def px_generation_mlp(z, params, *, tile_b=2048):
    """z: (B, in_dim) float32. params: dict of weights (see init_params)."""
    B, in_dim = z.shape
    H = params["w1"].shape[1]
    out_dim = params["w2"].shape[1]
    f32 = jnp.float32

    # Big tiles amortize per-step overhead; cap at ~ceil(B/4) so large batches still
    # produce >=4 tiles (v7x megacore uses both TensorCores on the "parallel" axis).
    tb = min(tile_b, max(8, _round_up(pl.cdiv(B, 4), 8)))
    b_p = _round_up(B, tb)
    n_tiles = b_p // tb

    z = z.astype(f32)
    if b_p != B:
        # Batch-only zero padding; padded rows contribute exactly 0 to the BN stats
        # because the Linear1 bias is dropped inside the kernels (it cancels in BN).
        z = jnp.pad(z, ((0, b_p - B), (0, 0)))

    w1 = params["w1"].astype(f32)                       # (in_dim, H), unpadded
    gamma = params["gamma"].astype(f32).reshape(1, H)
    beta = params["beta"].astype(f32).reshape(1, H)
    w2 = params["w2"].astype(f32)                       # (H, out_dim), unpadded
    b2 = params["b2"].astype(f32).reshape(1, out_dim)
    # NOTE: params["b1"] is intentionally unused -- it is mathematically inert under
    # train-mode BatchNorm and dropping it saves VALU work and avoids stats masking.

    # Split the stats pass across two cores when the tile count allows (v7x).
    n_split = 2 if (n_tiles >= 2 and n_tiles % 2 == 0) else 1
    tps = n_tiles // n_split
    stats_rows = n_split * 8

    vmem_bytes = _vmem_limit(tb, in_dim, H, out_dim, stats_rows)

    # ---- Pass 1: full-batch BN statistics (partial per-split accumulators) ----
    x1_spec = pl.BlockSpec((tb, in_dim), lambda c, i: (c * tps + i, 0))
    w1_1spec = pl.BlockSpec((in_dim, H), lambda c, i: (0, 0))
    acc_spec = pl.BlockSpec((8, H), lambda c, i: (c, 0))

    sum_h, sumsq_h = pl.pallas_call(
        _stats_kernel,
        out_shape=(jax.ShapeDtypeStruct((stats_rows, H), f32),
                   jax.ShapeDtypeStruct((stats_rows, H), f32)),
        grid=(n_split, tps),
        in_specs=[x1_spec, w1_1spec],
        out_specs=(acc_spec, acc_spec),
        compiler_params=pltpu.CompilerParams(
            dimension_semantics=("parallel", "arbitrary"),
            vmem_limit_bytes=vmem_bytes),
    )(z, w1)

    # ---- Pass 2: fused BN affine + exact GELU + Linear2, lane-exact output ----
    x2_spec = pl.BlockSpec((tb, in_dim), lambda i: (i, 0))
    w1_2spec = pl.BlockSpec((in_dim, H), lambda i: (0, 0))
    stats_spec = pl.BlockSpec((stats_rows, H), lambda i: (0, 0))
    vecH_spec = pl.BlockSpec((1, H), lambda i: (0, 0))
    w2_spec = pl.BlockSpec((H, out_dim), lambda i: (0, 0))
    vecO_spec = pl.BlockSpec((1, out_dim), lambda i: (0, 0))

    out = pl.pallas_call(
        functools.partial(_apply_kernel, true_b=B),
        out_shape=jax.ShapeDtypeStruct((b_p, out_dim), f32),
        grid=(n_tiles,),
        in_specs=[x2_spec, w1_2spec, stats_spec, stats_spec,
                  vecH_spec, vecH_spec, w2_spec, vecO_spec],
        out_specs=pl.BlockSpec((tb, out_dim), lambda i: (i, 0)),
        compiler_params=pltpu.CompilerParams(
            dimension_semantics=("parallel",),
            vmem_limit_bytes=vmem_bytes),
    )(z, w1, sum_h, sumsq_h, gamma, beta, w2, b2)

    if b_p != B:
        out = out[:B]
    return out


def init_params(key, in_dim, out_dim, hidden_dim=512):
    """Deterministic synthetic parameters (shapes follow nn.Linear / nn.BatchNorm1d)."""
    k1, k2, k3, k4 = jax.random.split(key, 4)
    # Linear weights stored already transposed to (in, out) for x @ W.
    w1 = jax.random.normal(k1, (in_dim, hidden_dim), jnp.float32) * (1.0 / jnp.sqrt(in_dim))
    b1 = jax.random.normal(k2, (1, hidden_dim), jnp.float32) * 0.01
    w2 = jax.random.normal(k3, (hidden_dim, out_dim), jnp.float32) * (1.0 / jnp.sqrt(hidden_dim))
    b2 = jax.random.normal(k4, (1, out_dim), jnp.float32) * 0.01
    # BatchNorm affine params (PyTorch init: gamma=1, beta=0).
    gamma = jnp.ones((1, hidden_dim), jnp.float32)
    beta = jnp.zeros((1, hidden_dim), jnp.float32)
    return {"w1": w1, "b1": b1, "gamma": gamma, "beta": beta, "w2": w2, "b2": b2}


def reference(z, p):
    h = z @ p["w1"] + p["b1"]
    mean = jnp.mean(h, axis=0, keepdims=True)
    var = jnp.mean((h - mean) ** 2, axis=0, keepdims=True)
    hn = (h - mean) / jnp.sqrt(var + BN_EPS) * p["gamma"] + p["beta"]
    g = 0.5 * hn * (1.0 + jax.lax.erf(hn * _INV_SQRT2))
    return g @ p["w2"] + p["b2"]


if __name__ == "__main__":
    B, in_dim, hidden, out_dim = 8, 32, 512, 64
    key = jax.random.PRNGKey(0)
    kz, kp = jax.random.split(key)
    z = jax.random.normal(kz, (B, in_dim), jnp.float32)
    params = init_params(kp, in_dim, out_dim, hidden)

    out = jax.block_until_ready(px_generation_mlp(z, params))
    ref = jax.block_until_ready(reference(z, params))

    assert out.shape == (B, out_dim)
    max_err = float(jnp.max(jnp.abs(out - ref)))
    assert jnp.allclose(out, ref, atol=1e-4, rtol=1e-4), max_err
    print("KERNEL_OK")
</pallas_src>

<mosaic_0001>
module attributes {stable_mosaic.version = 11 : i64} {
  func.func @_stats_kernel(%arg0: i32, %arg1: i32, %arg2: memref<8x32xf32, #tpu.memory_space<vmem>>, %arg3: memref<32x512xf32, #tpu.memory_space<vmem>>, %arg4: memref<8x512xf32, #tpu.memory_space<vmem>>, %arg5: memref<8x512xf32, #tpu.memory_space<vmem>>) attributes {dimension_semantics = [#tpu.dimension_semantics<parallel>, #tpu.dimension_semantics<arbitrary>], iteration_bounds = array<i64: 1, 1>, scalar_prefetch = 0 : i64, scratch_operands = 0 : i64, tpu.core_type = #tpu.core_type<tc>, window_params = [{transform_indices = @transform_0, window_bounds = array<i64: 8, 32>}, {pipeline_mode = #tpu.pipeline_mode<synchronous>, transform_indices = @transform_1, window_bounds = array<i64: 32, 512>}, {transform_indices = @transform_2, window_bounds = array<i64: 8, 512>}, {transform_indices = @transform_3, window_bounds = array<i64: 8, 512>}]} {
    %c0_i32 = arith.constant 0 : i32
    %0 = arith.cmpi eq, %arg1, %c0_i32 : i32
    %1 = arith.extui %0 : i1 to i32
    %c0_i32_0 = arith.constant 0 : i32
    %2 = arith.cmpi ne, %1, %c0_i32_0 : i32
    scf.if %2 {
      %cst_14 = arith.constant 0.000000e+00 : f32
      %16 = vector.broadcast %cst_14 : f32 to vector<8x512xf32>
      %c0_15 = arith.constant 0 : index
      %c0_16 = arith.constant 0 : index
      %17 = vector.load %arg4[%c0_15, %c0_16] : memref<8x512xf32, #tpu.memory_space<vmem>>, vector<8x512xf32>
      tpu.vector_store %arg4[%c0_15, %c0_16], %16 {strides = array<i32>} : memref<8x512xf32, #tpu.memory_space<vmem>>, vector<8x512xf32>,
      %cst_17 = arith.constant 0.000000e+00 : f32
      %18 = vector.broadcast %cst_17 : f32 to vector<8x512xf32>
      %c0_18 = arith.constant 0 : index
      %c0_19 = arith.constant 0 : index
      %19 = vector.load %arg5[%c0_18, %c0_19] : memref<8x512xf32, #tpu.memory_space<vmem>>, vector<8x512xf32>
      tpu.vector_store %arg5[%c0_18, %c0_19], %18 {strides = array<i32>} : memref<8x512xf32, #tpu.memory_space<vmem>>, vector<8x512xf32>,
    } else {
    }
    %c0 = arith.constant 0 : index
    %c0_1 = arith.constant 0 : index
    %3 = vector.load %arg2[%c0, %c0_1] : memref<8x32xf32, #tpu.memory_space<vmem>>, vector<8x32xf32>
    %c0_2 = arith.constant 0 : index
    %c0_3 = arith.constant 0 : index
    %4 = vector.load %arg3[%c0_2, %c0_3] : memref<32x512xf32, #tpu.memory_space<vmem>>, vector<32x512xf32>
    %cst = arith.constant dense<0.000000e+00> : vector<8x512xf32>
    %5 = tpu.matmul %3, %4, %cst {dimension_numbers = #tpu.dot_dimension_numbers<[1], [0], [0], [1], [0, 0, 1, 1], [], []>} : vector<8x32xf32>, vector<32x512xf32>, vector<8x512xf32> -> vector<8x512xf32>
    %6 = vector.shape_cast %5 : vector<8x512xf32> to vector<1x8x512xf32>
    %c0_4 = arith.constant 0 : index
    %c0_5 = arith.constant 0 : index
    %7 = vector.load %arg4[%c0_4, %c0_5] : memref<8x512xf32, #tpu.memory_space<vmem>>, vector<8x512xf32>
    %cst_6 = arith.constant dense<0.000000e+00> : vector<8x512xf32>
    %8 = vector.multi_reduction <add>, %6, %cst_6 [0] : vector<1x8x512xf32> to vector<8x512xf32>
    %9 = arith.addf %7, %8 : vector<8x512xf32>
    %c0_7 = arith.constant 0 : index
    %c0_8 = arith.constant 0 : index
    %10 = vector.load %arg4[%c0_7, %c0_8] : memref<8x512xf32, #tpu.memory_space<vmem>>, vector<8x512xf32>
    tpu.vector_store %arg4[%c0_7, %c0_8], %9 {strides = array<i32>} : memref<8x512xf32, #tpu.memory_space<vmem>>, vector<8x512xf32>,
    %c0_9 = arith.constant 0 : index
    %c0_10 = arith.constant 0 : index
    %11 = vector.load %arg5[%c0_9, %c0_10] : memref<8x512xf32, #tpu.memory_space<vmem>>, vector<8x512xf32>
    %12 = arith.mulf %6, %6 : vector<1x8x512xf32>
    %cst_11 = arith.constant dense<0.000000e+00> : vector<8x512xf32>
    %13 = vector.multi_reduction <add>, %12, %cst_11 [0] : vector<1x8x512xf32> to vector<8x512xf32>
    %14 = arith.addf %11, %13 : vector<8x512xf32>
    %c0_12 = arith.constant 0 : index
    %c0_13 = arith.constant 0 : index
    %15 = vector.load %arg5[%c0_12, %c0_13] : memref<8x512xf32, #tpu.memory_space<vmem>>, vector<8x512xf32>
    tpu.vector_store %arg5[%c0_12, %c0_13], %14 {strides = array<i32>} : memref<8x512xf32, #tpu.memory_space<vmem>>, vector<8x512xf32>,
    return
  }
  func.func @transform_0(%arg0: i32, %arg1: i32) -> (i32, i32) {
    %c1_i32 = arith.constant 1 : i32
    %0 = arith.muli %arg0, %c1_i32 : i32
    %1 = arith.addi %0, %arg1 : i32
    %c0_i32 = arith.constant 0 : i32
    %c0_i32_0 = arith.constant 0 : i32
    return %1, %c0_i32 : i32, i32
  }
  func.func @transform_1(%arg0: i32, %arg1: i32) -> (i32, i32) {
    %c0_i32 = arith.constant 0 : i32
    %c0_i32_0 = arith.constant 0 : i32
    %c0_i32_1 = arith.constant 0 : i32
    return %c0_i32, %c0_i32_0 : i32, i32
  }
  func.func @transform_2(%arg0: i32, %arg1: i32) -> (i32, i32) {
    %c0_i32 = arith.constant 0 : i32
    %c0_i32_0 = arith.constant 0 : i32
    return %arg0, %c0_i32 : i32, i32
  }
  func.func @transform_3(%arg0: i32, %arg1: i32) -> (i32, i32) {
    %c0_i32 = arith.constant 0 : i32
    %c0_i32_0 = arith.constant 0 : i32
    return %arg0, %c0_i32 : i32, i32
  }
}

</mosaic_0001>

<bundles_post_ra>
// kernel: tpu_custom_call.1
= control target key start
LH: loop header
LB: loop body
LE: loop exit
PB: predicated region body
PF: predicated region fallthrough
CT: control target
= control target key end

     0   :  { %9 = vsyncpa [#allocation3], 0  ;;  %s389_s0 = inlined_call_operand.hbm [shape: f32[8,32], index: 0, kind: input, shape index: {}]   ;;  %s390_s1 = inlined_call_operand.hbm [shape: f32[32,512], index: 1, kind: input, shape index: {}]   ;;  %s391_s2 = inlined_call_operand.hbm [shape: f32[8,512], index: 2, kind: output, shape index: {0}]   ;;  %s392_s3 = inlined_call_operand.hbm [shape: f32[8,512], index: 3, kind: output, shape index: {1}]  }
   0x1   :  { %10 = vsyncpa [#allocation6], 0 }
   0x2   :  { %11 = vsyncpa [#allocation4], 0 }
   0x3   :  { %12 = vsyncpa [#allocation9], 0  ;;  %s21_s14 = sshll.u32 %s389_s0, 4  ;;  %s347_s15 = smov [#allocation2]   ;;  %s22_s14 = int_to_ptr.hbm [resolvable:$true] %s21_s14 }
   0x4   :  { %s23_s16 = sshll.u32 %s347_s15, 4  ;;  %s31_s19 = sshll.u32 %s390_s1, 4  ;;  %s24_s16 = int_to_ptr.vmem [resolvable:$true] %s23_s16  ;;  %s32_s19 = int_to_ptr.hbm [resolvable:$true] %s31_s19 }
   0x5   :  { %26 = dma.hbm_to_vmem [thread:$0]  %s22_s14, 128, %s24_s16, [#allocation3]  }
   0x6   :  { %s348_s20 = smov [#allocation5]   ;;  %s349_s22 = smov 512  }
   0x7   :  { %s33_s21 = sshll.u32 %s348_s20, 4  ;;  %s350_s23 = smov 32   ;;  %s34_s21 = int_to_ptr.vmem [resolvable:$true] %s33_s21 }
   0x8   :  { %39 = dma.hbm_to_vmem [thread:$0]  %s32_s19, 2048, %s34_s21, [#allocation6], %s349_s22, %s349_s22, %s350_s23  }
   0x9   :  { %339 = dma.done.wait [#allocation3], 128  }
   0xa   :  { %340 = vsyncadd [#allocation3], 4294967168 }
   0xb   :  { %341 = dma.done.wait [#allocation6], 2048  }
   0xc   :  { %342 = vsyncadd [#allocation6], 4294965248  ;;  %v76_v0 = vld [vmem:[#allocation5 + $0x70] sm:$0xff]  ;;  %v77_v1 = vld [vmem:[#allocation5 + $0x78] sm:$0xff]  ;;  %vm78_vm0 = vcmask 261120   ;;  %s351_s0 = smov [#allocation7]  }
   0xd   :  { %v72_v2 = vld [vmem:[#allocation5 + $0x50] sm:$0xff]  ;;  %134 = vmatpush.msra.mxu2 %v76_v0  ;;  %154 = vmatpush.msra.mxu3 %v77_v1  ;;  %v73_v3 = vld [vmem:[#allocation5 + $0x58] sm:$0xff]  ;;  %v74_v6 = vld [vmem:[#allocation5 + $0x60] sm:$0xff]  ;;  %s203_s1 = sshll.u32 %s351_s0, 4  ;;  %s205_s26 = sshll.u32 %s391_s2, 4  ;;  %s204_s1 = int_to_ptr.vmem [resolvable:$true] %s203_s1  ;;  %s206_s26 = int_to_ptr.hbm [resolvable:$true] %s205_s26 }
   0xe   :  { %v68_v4 = vld [vmem:[#allocation5 + $0x30] sm:$0xff]  ;;  %v69_v5 = vld [vmem:[#allocation5 + $0x38] sm:$0xff]  ;;  %v75_v7 = vld [vmem:[#allocation5 + $0x68] sm:$0xff]  ;;  %94 = vmatpush.msra.mxu0 %v74_v6  ;;  %s352_s27 = smov [#allocation8]   ;;  %s216_s4 = sshll.u32 %s392_s3, 4  ;;  %s217_s4 = int_to_ptr.hbm [resolvable:$true] %s216_s4 }
   0xf   :  { %135 = vmatpush.msra.mxu2 %v72_v2  ;;  %155 = vmatpush.msra.mxu3 %v73_v3  ;;  %v70_v8 = vld [vmem:[#allocation5 + $0x40] sm:$0xff]  ;;  %v64_v9 = vld [vmem:[#allocation5 + $0x10] sm:$0xff]  ;;  %v65_v10 = vld [vmem:[#allocation5 + $0x18] sm:$0xff]  ;;  %s214_s28 = sshll.u32 %s352_s27, 4  ;;  %s215_s28 = int_to_ptr.vmem [resolvable:$true] %s214_s28 }
  0x10   :  { %114 = vmatpush.msra.mxu1 %v75_v7  ;;  %v71_v11 = vld [vmem:[#allocation5 + $0x48] sm:$0xff]  ;;  %v61_v12 = vld [vmem:[#allocation2] sm:$0xff]  ;;  %95 = vmatpush.msra.mxu0 %v70_v8  ;;  %v66_v13 = vld [vmem:[#allocation5 + $0x20] sm:$0xff] }
  0x11   :  { %136 = vmatpush.msra.mxu2 %v68_v4  ;;  %156 = vmatpush.msra.mxu3 %v69_v5  ;;  %v67_v14 = vld [vmem:[#allocation5 + $0x28] sm:$0xff]  ;;  %v62_v15 = vld [vmem:[#allocation5] sm:$0xff] }
  0x12   :  { %115 = vmatpush.msra.mxu1 %v71_v11  ;;  %v63_v16 = vld [vmem:[#allocation5 + $0x8] sm:$0xff]  ;;  %96 = vmatpush.msra.mxu0 %v66_v13 }
  0x13   :  { %137 = vmatpush.msra.mxu2 %v64_v9  ;;  %157 = vmatpush.msra.mxu3 %v65_v10 }
  0x14   :  { %234 = vmatmul.msk.f32.vlgmr.msra.gmra.mxu2 %vm78_vm0, %v61_v12  ;;  %235 = vmatmul.msk.f32.vlgmr.msra.gmra.mxu3 %vm78_vm0, %v61_v12 }
  0x15   :  { %116 = vmatpush.msra.mxu1 %v67_v14  ;;  %97 = vmatpush.msra.mxu0 %v62_v15 }
  0x16   :  { %232 = vmatmul.msk.f32.vlgmr.msra.gmra.mxu0 %vm78_vm0, %v61_v12 }
  0x17   :  { %117 = vmatpush.msra.mxu1 %v63_v16 }
  0x18   :  { %233 = vmatmul.msk.f32.vlgmr.msra.gmra.mxu1 %vm78_vm0, %v61_v12 }
  0x93   :  { %v99_v17 = vpop.f32.mrf.mxu0 }
  0x94   :  { %v182_v19 = vmul.f32 %v99_v17, %v99_v17  ;;  %174 = vst [vmem:[#allocation7] sm:$0xff] %v99_v17 }
  0x95   :  { %v119_v18 = vpop.f32.mrf.mxu1 }
  0x96   :  { %v183_v20 = vmul.f32 %v119_v18, %v119_v18  ;;  %175 = vst [vmem:[#allocation7 + $0x8] sm:$0xff] %v119_v18 }
  0x97   :  { %v139_v21 = vpop.f32.mrf.mxu2  ;;  %v159_v22 = vpop.f32.mrf.mxu3  ;;  %194 = vst [vmem:[#allocation8] sm:$0xff] %v182_v19 }
  0x98   :  { %v184_v23 = vmul.f32 %v139_v21, %v139_v21  ;;  %v185_v24 = vmul.f32 %v159_v22, %v159_v22  ;;  %195 = vst [vmem:[#allocation8 + $0x8] sm:$0xff] %v183_v20 }
  0x99   :  { %176 = vst [vmem:[#allocation7 + $0x10] sm:$0xff] %v139_v21 }
  0x9a   :  { %196 = vst [vmem:[#allocation8 + $0x10] sm:$0xff] %v184_v23 }
  0x9b   :  { %177 = vst [vmem:[#allocation7 + $0x18] sm:$0xff] %v159_v22 }
  0x9c   :  { %197 = vst [vmem:[#allocation8 + $0x18] sm:$0xff] %v185_v24  ;;  %208 = dma.vmem_to_hbm [thread:$0]  %s204_s1, 512, %s206_s26, [#allocation4]  }
  0x9d   :  { %219 = dma.vmem_to_hbm [thread:$0]  %s215_s28, 512, %s217_s4, [#allocation9]  }
  0x9e   :  { %343 = dma.done.wait [#allocation4], 512  }
  0x9f   :  { %344 = vsyncadd [#allocation4], 4294966784 }
  0xa0   :  { %345 = dma.done.wait [#allocation9], 512  }
  0xa1   :  { %346 = vsyncadd [#allocation9], 4294966784 }
  0xa2   :  { %228 = vsyncpa [#allocation3], 1 }
  0xa3   :  { %229 = vsyncpa [#allocation6], 1 }
  0xa4   :  { %230 = vsyncpa [#allocation4], 1 }
  0xa5   :  { %231 = vsyncpa [#allocation9], 1 }

</bundles_post_ra>
